<compile_context>
chip_gen: v7x
topology: tpu7x:2x2x1
jax: 0.10.0
libtpu: 0.0.40
codegen_flags: <defaults>
</compile_context>

<pallas_src>
import functools

import jax
import jax.numpy as jnp
from jax import lax
from jax.experimental import pallas as pl
from jax.experimental.pallas import tpu as pltpu


def _round_up(x, m):
    return (x + m - 1) // m * m


def _grid_sample_kernel(inp_ref, grid_ref, out_ref, *, C, H_in, W_in,
                        mode, padding_mode, align_corners, use_bf16_mxu):
    inp = inp_ref[0]                       # (C*H_in, W_in)
    g = grid_ref[0]                        # (2, TILE_P)
    tile_p = g.shape[1]

    x = g[0:1, :].astype(jnp.float32)      # (1, TILE_P) normalized width coords
    y = g[1:2, :].astype(jnp.float32)      # (1, TILE_P) normalized height coords

    def unnormalize(coord, size):
        if align_corners:
            return (coord + 1.0) * 0.5 * (size - 1)
        return ((coord + 1.0) * size - 1.0) * 0.5

    ix = unnormalize(x, W_in)
    iy = unnormalize(y, H_in)

    if padding_mode == "border":
        ix = jnp.clip(ix, 0.0, W_in - 1.0)
        iy = jnp.clip(iy, 0.0, H_in - 1.0)
    elif padding_mode == "zeros":
        # Safety clamp: keeps the float->int cast well-defined for far-OOB grid
        # values while every corner of a clamped far-OOB point stays OOB, so it
        # still contributes exactly zero (matches PyTorch zeros padding).
        ix = jnp.clip(ix, -2.0, W_in + 1.0)
        iy = jnp.clip(iy, -2.0, H_in + 1.0)
    else:
        # TODO(synk): padding_mode='reflection' not implemented
        raise NotImplementedError(padding_mode)

    # Separable one-hot weights: no (Q, P) iota, no integer div/mod.
    h_iota = lax.broadcasted_iota(jnp.int32, (H_in, tile_p), 0)
    w_iota = lax.broadcasted_iota(jnp.int32, (W_in, tile_p), 0)

    if mode == "bilinear":
        x0f = jnp.floor(ix)
        y0f = jnp.floor(iy)
        wx1 = ix - x0f
        wx0 = 1.0 - wx1
        wy1 = iy - y0f
        wy0 = 1.0 - wy1
        x0 = x0f.astype(jnp.int32)
        x1 = x0 + 1
        y0 = y0f.astype(jnp.int32)
        y1 = y0 + 1
        # (W_in, TILE_P) and (H_in, TILE_P); OOB corner indices match nothing.
        wx = ((w_iota == x0).astype(jnp.float32) * wx0
              + (w_iota == x1).astype(jnp.float32) * wx1)
        wy = ((h_iota == y0).astype(jnp.float32) * wy0
              + (h_iota == y1).astype(jnp.float32) * wy1)
    elif mode == "nearest":
        xn = jnp.round(ix).astype(jnp.int32)
        yn = jnp.round(iy).astype(jnp.int32)
        wx = (w_iota == xn).astype(jnp.float32)
        wy = (h_iota == yn).astype(jnp.float32)
    else:
        # TODO(synk): mode='bicubic' not implemented
        raise NotImplementedError(mode)

    if use_bf16_mxu:
        # Opt-in: bf16 MXU feed (v6e/v7x native) with f32 accumulation.
        lhs = inp.astype(jnp.bfloat16)
        rhs = wx.astype(jnp.bfloat16)
    else:
        lhs = inp.astype(jnp.float32)
        rhs = wx

    # Gather along W via the MXU, then weighted reduction over H on VPU/XLU.
    t = jnp.dot(lhs, rhs, preferred_element_type=jnp.float32)    # (C*H_in, TILE_P)
    t3 = t.reshape(C, H_in, tile_p)                              # tile-aligned split
    out = jnp.sum(t3 * wy[None, :, :], axis=1)                   # (C, TILE_P)
    out_ref[0] = out.astype(out_ref.dtype)


def grid_sample(inp, grid, *, mode="bilinear", padding_mode="zeros",
                align_corners=False, use_bf16_mxu=False):
    """Pallas equivalent of F.grid_sample(input, grid, mode, padding_mode, align_corners)."""
    N, C, H_in, W_in = inp.shape
    Ng, H_out, W_out, two = grid.shape
    assert N == Ng and two == 2
    P = H_out * W_out

    # Layout: (N, C*H_in, W_in) input rows, (N, 2, P) grid (row0=x, row1=y).
    inp_rs = inp.reshape(N, C * H_in, W_in)
    grid_t = jnp.transpose(grid.reshape(N, P, 2), (0, 2, 1))   # (N, 2, P)

    # Pad P to a lane-dense multiple of 128 and tile it with a real grid axis.
    TILE_P = min(512, _round_up(P, 128))
    P_pad = _round_up(P, TILE_P)
    if P_pad != P:
        # Pad coords with -2.0: well outside [-1, 1] -> zero weights; sliced off.
        grid_t = jnp.pad(grid_t, ((0, 0), (0, 0), (0, P_pad - P)),
                         constant_values=-2.0)

    kernel = functools.partial(
        _grid_sample_kernel, C=C, H_in=H_in, W_in=W_in,
        mode=mode, padding_mode=padding_mode, align_corners=align_corners,
        use_bf16_mxu=use_bf16_mxu)

    out = pl.pallas_call(
        kernel,
        out_shape=jax.ShapeDtypeStruct((N, C, P_pad), inp.dtype),
        grid=(N, P_pad // TILE_P),
        in_specs=[
            # Input stays resident across P tiles of the same batch element.
            pl.BlockSpec((1, C * H_in, W_in), lambda n, p: (n, 0, 0)),
            pl.BlockSpec((1, 2, TILE_P), lambda n, p: (n, 0, p)),
        ],
        out_specs=pl.BlockSpec((1, C, TILE_P), lambda n, p: (n, 0, p)),
        compiler_params=pltpu.CompilerParams(
            dimension_semantics=("parallel", "parallel"),
            vmem_limit_bytes=32 * 1024 * 1024),
    )(inp_rs, grid_t)

    out = out[:, :, :P]
    return out.reshape(N, C, H_out, W_out)


def _ref_grid_sample(inp, grid, mode, padding_mode, align_corners):
    """Pure-JAX (gather based) reference for correctness checking."""
    N, C, H, W = inp.shape
    x = grid[..., 0]
    y = grid[..., 1]

    def unnorm(c, size):
        if align_corners:
            return (c + 1.0) * 0.5 * (size - 1)
        return ((c + 1.0) * size - 1.0) * 0.5

    ix = unnorm(x, W)
    iy = unnorm(y, H)
    if padding_mode == "border":
        ix = jnp.clip(ix, 0.0, W - 1.0)
        iy = jnp.clip(iy, 0.0, H - 1.0)

    n_idx = jnp.arange(N)[:, None, None]

    def gather(yy, xx):
        mask = ((yy >= 0) & (yy <= H - 1) & (xx >= 0) & (xx <= W - 1))
        yyc = jnp.clip(yy, 0, H - 1)
        xxc = jnp.clip(xx, 0, W - 1)
        vals = inp[n_idx, :, yyc, xxc]          # (N, Ho, Wo, C)
        return vals * mask[..., None]

    if mode == "bilinear":
        x0 = jnp.floor(ix)
        y0 = jnp.floor(iy)
        wx1 = ix - x0
        wx0 = 1.0 - wx1
        wy1 = iy - y0
        wy0 = 1.0 - wy1
        x0i = x0.astype(jnp.int32); x1i = x0i + 1
        y0i = y0.astype(jnp.int32); y1i = y0i + 1
        out = (gather(y0i, x0i) * (wy0 * wx0)[..., None]
               + gather(y0i, x1i) * (wy0 * wx1)[..., None]
               + gather(y1i, x0i) * (wy1 * wx0)[..., None]
               + gather(y1i, x1i) * (wy1 * wx1)[..., None])
    else:  # nearest
        xi = jnp.round(ix).astype(jnp.int32)
        yi = jnp.round(iy).astype(jnp.int32)
        out = gather(yi, xi)
    return jnp.transpose(out, (0, 3, 1, 2))     # (N, C, Ho, Wo)


if __name__ == "__main__":
    # _TestModel(mode='bilinear', padding_mode='zeros', align_corners=False)
    mode, padding_mode, align_corners = "bilinear", "zeros", False

    key = jax.random.PRNGKey(0)
    k_inp, k_grid = jax.random.split(key)
    N, C, H_in, W_in = 2, 4, 16, 16
    H_out, W_out = 8, 8

    x = jax.random.normal(k_inp, (N, C, H_in, W_in), dtype=jnp.float32)
    # Values slightly outside [-1, 1] to exercise the "zeros" padding path.
    sampling_grid = jax.random.uniform(
        k_grid, (N, H_out, W_out, 2), dtype=jnp.float32, minval=-1.2, maxval=1.2)

    out = grid_sample(x, sampling_grid, mode=mode,
                      padding_mode=padding_mode, align_corners=align_corners)
    out = jax.block_until_ready(out)

    ref = _ref_grid_sample(x, sampling_grid, mode, padding_mode, align_corners)
    assert out.shape == (N, C, H_out, W_out)
    assert jnp.allclose(out, ref, atol=1e-5, rtol=1e-5), (
        f"max abs err = {jnp.max(jnp.abs(out - ref))}")

    print("KERNEL_OK")
</pallas_src>

<mosaic_0001>
module attributes {stable_mosaic.version = 11 : i64} {
  func.func @_grid_sample_kernel(%arg0: i32, %arg1: i32, %arg2: memref<1x64x16xf32, #tpu.memory_space<vmem>>, %arg3: memref<1x2x128xf32, #tpu.memory_space<vmem>>, %arg4: memref<1x4x128xf32, #tpu.memory_space<vmem>>) attributes {dimension_semantics = [#tpu.dimension_semantics<parallel>, #tpu.dimension_semantics<parallel>], iteration_bounds = array<i64: 2, 1>, scalar_prefetch = 0 : i64, scratch_operands = 0 : i64, tpu.core_type = #tpu.core_type<tc>, window_params = [{transform_indices = @transform_0, window_bounds = array<i64: 1, 64, 16>}, {transform_indices = @transform_1, window_bounds = array<i64: 1, 2, 128>}, {transform_indices = @transform_2, window_bounds = array<i64: 1, 4, 128>}]} {
    %c0 = arith.constant 0 : index
    %c0_0 = arith.constant 0 : index
    %c0_1 = arith.constant 0 : index
    %0 = vector.load %arg2[%c0, %c0_0, %c0_1] : memref<1x64x16xf32, #tpu.memory_space<vmem>>, vector<1x64x16xf32>
    %1 = vector.shape_cast %0 : vector<1x64x16xf32> to vector<64x16xf32>
    %c0_2 = arith.constant 0 : index
    %c0_3 = arith.constant 0 : index
    %c0_4 = arith.constant 0 : index
    %2 = vector.load %arg3[%c0_2, %c0_3, %c0_4] : memref<1x2x128xf32, #tpu.memory_space<vmem>>, vector<1x2x128xf32>
    %3 = vector.shape_cast %2 : vector<1x2x128xf32> to vector<2x128xf32>
    %4 = vector.extract_strided_slice %3 {offsets = [0, 0], sizes = [1, 128], strides = [1, 1]} : vector<2x128xf32> to vector<1x128xf32>
    %5 = vector.extract_strided_slice %3 {offsets = [1, 0], sizes = [1, 128], strides = [1, 1]} : vector<2x128xf32> to vector<1x128xf32>
    %cst = arith.constant 1.000000e+00 : f32
    %6 = vector.broadcast %cst : f32 to vector<1x128xf32>
    %7 = arith.addf %4, %6 : vector<1x128xf32>
    %cst_5 = arith.constant 1.600000e+01 : f32
    %8 = vector.broadcast %cst_5 : f32 to vector<1x128xf32>
    %9 = arith.mulf %7, %8 : vector<1x128xf32>
    %cst_6 = arith.constant 1.000000e+00 : f32
    %10 = vector.broadcast %cst_6 : f32 to vector<1x128xf32>
    %11 = arith.subf %9, %10 : vector<1x128xf32>
    %cst_7 = arith.constant 5.000000e-01 : f32
    %12 = vector.broadcast %cst_7 : f32 to vector<1x128xf32>
    %13 = arith.mulf %11, %12 : vector<1x128xf32>
    %cst_8 = arith.constant 1.000000e+00 : f32
    %14 = vector.broadcast %cst_8 : f32 to vector<1x128xf32>
    %15 = arith.addf %5, %14 : vector<1x128xf32>
    %cst_9 = arith.constant 1.600000e+01 : f32
    %16 = vector.broadcast %cst_9 : f32 to vector<1x128xf32>
    %17 = arith.mulf %15, %16 : vector<1x128xf32>
    %cst_10 = arith.constant 1.000000e+00 : f32
    %18 = vector.broadcast %cst_10 : f32 to vector<1x128xf32>
    %19 = arith.subf %17, %18 : vector<1x128xf32>
    %cst_11 = arith.constant 5.000000e-01 : f32
    %20 = vector.broadcast %cst_11 : f32 to vector<1x128xf32>
    %21 = arith.mulf %19, %20 : vector<1x128xf32>
    %cst_12 = arith.constant -2.000000e+00 : f32
    %cst_13 = arith.constant 1.700000e+01 : f32
    %22 = vector.broadcast %cst_12 : f32 to vector<1x128xf32>
    %23 = arith.maximumf %22, %13 : vector<1x128xf32>
    %24 = vector.broadcast %cst_13 : f32 to vector<1x128xf32>
    %25 = arith.minimumf %24, %23 : vector<1x128xf32>
    %cst_14 = arith.constant -2.000000e+00 : f32
    %cst_15 = arith.constant 1.700000e+01 : f32
    %26 = vector.broadcast %cst_14 : f32 to vector<1x128xf32>
    %27 = arith.maximumf %26, %21 : vector<1x128xf32>
    %28 = vector.broadcast %cst_15 : f32 to vector<1x128xf32>
    %29 = arith.minimumf %28, %27 : vector<1x128xf32>
    %30 = tpu.iota {dimensions = array<i32: 0>} : vector<16x128xi32>
    %31 = tpu.iota {dimensions = array<i32: 0>} : vector<16x128xi32>
    %32 = math.floor %25 : vector<1x128xf32>
    %33 = math.floor %29 : vector<1x128xf32>
    %34 = arith.subf %25, %32 : vector<1x128xf32>
    %cst_16 = arith.constant 1.000000e+00 : f32
    %35 = vector.broadcast %cst_16 : f32 to vector<1x128xf32>
    %36 = arith.subf %35, %34 : vector<1x128xf32>
    %37 = arith.subf %29, %33 : vector<1x128xf32>
    %cst_17 = arith.constant 1.000000e+00 : f32
    %38 = vector.broadcast %cst_17 : f32 to vector<1x128xf32>
    %39 = arith.subf %38, %37 : vector<1x128xf32>
    %40 = arith.fptosi %32 : vector<1x128xf32> to vector<1x128xi32>
    %c1_i32 = arith.constant 1 : i32
    %41 = vector.broadcast %c1_i32 : i32 to vector<1x128xi32>
    %42 = arith.addi %40, %41 : vector<1x128xi32>
    %43 = arith.fptosi %33 : vector<1x128xf32> to vector<1x128xi32>
    %c1_i32_18 = arith.constant 1 : i32
    %44 = vector.broadcast %c1_i32_18 : i32 to vector<1x128xi32>
    %45 = arith.addi %43, %44 : vector<1x128xi32>
    %46 = vector.broadcast %40 : vector<1x128xi32> to vector<16x128xi32>
    %47 = arith.cmpi eq, %31, %46 : vector<16x128xi32>
    %48 = arith.extui %47 : vector<16x128xi1> to vector<16x128xi32>
    %49 = arith.sitofp %48 : vector<16x128xi32> to vector<16x128xf32>
    %50 = vector.broadcast %36 : vector<1x128xf32> to vector<16x128xf32>
    %51 = arith.mulf %49, %50 : vector<16x128xf32>
    %52 = vector.broadcast %42 : vector<1x128xi32> to vector<16x128xi32>
    %53 = arith.cmpi eq, %31, %52 : vector<16x128xi32>
    %54 = arith.extui %53 : vector<16x128xi1> to vector<16x128xi32>
    %55 = arith.sitofp %54 : vector<16x128xi32> to vector<16x128xf32>
    %56 = vector.broadcast %34 : vector<1x128xf32> to vector<16x128xf32>
    %57 = arith.mulf %55, %56 : vector<16x128xf32>
    %58 = arith.addf %51, %57 : vector<16x128xf32>
    %59 = vector.broadcast %43 : vector<1x128xi32> to vector<16x128xi32>
    %60 = arith.cmpi eq, %30, %59 : vector<16x128xi32>
    %61 = arith.extui %60 : vector<16x128xi1> to vector<16x128xi32>
    %62 = arith.sitofp %61 : vector<16x128xi32> to vector<16x128xf32>
    %63 = vector.broadcast %39 : vector<1x128xf32> to vector<16x128xf32>
    %64 = arith.mulf %62, %63 : vector<16x128xf32>
    %65 = vector.broadcast %45 : vector<1x128xi32> to vector<16x128xi32>
    %66 = arith.cmpi eq, %30, %65 : vector<16x128xi32>
    %67 = arith.extui %66 : vector<16x128xi1> to vector<16x128xi32>
    %68 = arith.sitofp %67 : vector<16x128xi32> to vector<16x128xf32>
    %69 = vector.broadcast %37 : vector<1x128xf32> to vector<16x128xf32>
    %70 = arith.mulf %68, %69 : vector<16x128xf32>
    %71 = arith.addf %64, %70 : vector<16x128xf32>
    %cst_19 = arith.constant dense<0.000000e+00> : vector<64x128xf32>
    %72 = tpu.matmul %1, %58, %cst_19 {dimension_numbers = #tpu.dot_dimension_numbers<[1], [0], [0], [1], [0, 0, 1, 1], [], []>} : vector<64x16xf32>, vector<16x128xf32>, vector<64x128xf32> -> vector<64x128xf32>
    %73 = vector.shape_cast %72 : vector<64x128xf32> to vector<4x16x128xf32>
    %74 = vector.shape_cast %71 : vector<16x128xf32> to vector<1x16x128xf32>
    %75 = vector.broadcast %74 : vector<1x16x128xf32> to vector<4x16x128xf32>
    %76 = arith.mulf %73, %75 : vector<4x16x128xf32>
    %cst_20 = arith.constant dense<0.000000e+00> : vector<4x128xf32>
    %77 = vector.multi_reduction <add>, %76, %cst_20 [1] : vector<4x16x128xf32> to vector<4x128xf32>
    %c0_21 = arith.constant 0 : index
    %c0_22 = arith.constant 0 : index
    %c0_23 = arith.constant 0 : index
    %78 = vector.load %arg4[%c0_21, %c0_22, %c0_23] : memref<1x4x128xf32, #tpu.memory_space<vmem>>, vector<1x4x128xf32>
    %79 = vector.shape_cast %78 : vector<1x4x128xf32> to vector<4x128xf32>
    %80 = vector.shape_cast %77 : vector<4x128xf32> to vector<1x4x128xf32>
    tpu.vector_store %arg4[%c0_21, %c0_22, %c0_23], %80 {strides = array<i32>} : memref<1x4x128xf32, #tpu.memory_space<vmem>>, vector<1x4x128xf32>,
    return
  }
  func.func @transform_0(%arg0: i32, %arg1: i32) -> (i32, i32, i32) {
    %c0_i32 = arith.constant 0 : i32
    %c0_i32_0 = arith.constant 0 : i32
    %c0_i32_1 = arith.constant 0 : i32
    return %arg0, %c0_i32, %c0_i32_0 : i32, i32, i32
  }
  func.func @transform_1(%arg0: i32, %arg1: i32) -> (i32, i32, i32) {
    %c0_i32 = arith.constant 0 : i32
    %c0_i32_0 = arith.constant 0 : i32
    return %arg0, %c0_i32, %arg1 : i32, i32, i32
  }
  func.func @transform_2(%arg0: i32, %arg1: i32) -> (i32, i32, i32) {
    %c0_i32 = arith.constant 0 : i32
    %c0_i32_0 = arith.constant 0 : i32
    return %arg0, %c0_i32, %arg1 : i32, i32, i32
  }
}

</mosaic_0001>

<bundles_post_ra>
// kernel: tpu_custom_call.1
= control target key start
LH: loop header
LB: loop body
LE: loop exit
PB: predicated region body
PF: predicated region fallthrough
CT: control target
= control target key end

     0   :  { %7 = vsyncpa [#allocation3], 0  ;;  %s906_s0 = inlined_call_operand.vmem [shape: f32[2,64,16], index: 0, kind: input, shape index: {}]   ;;  %s907_s1 = inlined_call_operand.vmem [shape: f32[2,2,128], index: 1, kind: input, shape index: {}]   ;;  %s908_s2 = inlined_call_operand.hbm [shape: f32[2,4,128], index: 2, kind: output, shape index: {}]  }
   0x1   :  { %9 = vsyncpa [#allocation3 + $0x1], 0  ;;  %s769_s9 = smov 0   ;;  %s771_s10 = smov 0  }
   0x2   :  { %s773_s11 = smov 0   ;;  %s775_s12 = smov 0  }
   0x3   :  { %s777_s13 = smov 0   ;;  %s779_s14 = smov 0  }
   0x4 LB: > { %s551_s15 = sadd.s32 4294967295, %s750_s14   ;;  %s552_s16 = sadd.s32 4294967294, %s750_s14   ;;  %s750_s14 = sphi %s779_s14, %s15_s14   ;;  %s746_s13 = sphi %s777_s13, %s915_s13   ;;  %s742_s12 = sphi %s775_s12, %s914_s12   ;;  %s738_s11 = sphi %s773_s11, %s913_s11   ;;  %s734_s10 = sphi %s771_s10, %s912_s10   ;;  %s730_s9 = sphi %s769_s9, %s911_s9  }
   0x5   : > { %s27_s17 = sadd.s32 1, %s746_s13  ;;  %s90_s18 = sadd.s32 1, %s738_s11 }
   0x6   : > { %p29_p0 = scmp.ge.s32.totalorder %s27_s17, 2  ;;  %p100_p1 = scmp.ne.s32.totalorder %s738_s11, %s734_s10 }
   0x7   : > { %p101_p2 = scmp.eq.s32.totalorder %s551_s15, 1  ;;  %p106_p3 = scmp.ne.s32.totalorder %s734_s10, %s730_s9 }
   0x8   : > { %s917_s17 = smov (%p29_p0, %s27_s17), 0  ;;  %p107_p5 = scmp.eq.s32.totalorder %s552_s16, 1 }
   0x9   : > { %p809_p4 = por %p101_p2, %p100_p1  ;;  %s85_s20 = ssub.s32 %s746_s13, %s917_s17 }
   0xa   : > { %p555_p6 = scmp.ge.s32.totalorder %s750_s14, 1  ;;  %p88_p7 = scmp.eq.s32.totalorder %s85_s20, 0 }
   0xb   : > { %p816_p8 = por %p107_p5, %p106_p3  ;;  %p143_p9 = scmp.lt.s32.totalorder %s750_s14, 3 }
   0xc   : > { %s822_s22 = scalar_select %p88_p7, %s738_s11, %s90_s18  }
   0xd   : > { %p144_p10 = pnand %p555_p6, %p143_p9 }
   0xe   : > { %p172_p11 = scmp.lt.s32.totalorder (!%p144_p10), %s742_s12, 1  ;;  %vm275_vm0 = vcmask (!%p144_p10), 130048   ;;  %v199_v7 = vlaneseq (!%p144_p10)  ;;  %v752_v27 = vmov (!%p144_p10), 0.0   ;;  %s169_s4 = sand.u32 (!%p144_p10), 1, %s734_s10   ;;  %vm445_vm9 = vcmask (!%p144_p10), 1041409  }
   0xf   : > { %147 = sbr.rel (%p144_p10) target bundleno = 311 (0x137), region = 28  ;;  %s556_s5 = sshll.u32 (!%p144_p10), %s169_s4, 2  ;;  %vm447_vm10 = vcmask (!%p144_p10), 1042434   ;;  %vm449_vm11 = vcmask (!%p144_p10), 1043459  }
  0x10   : > { %v200_v10 = vshrl.u32 (!%p144_p10), %v199_v7, 7  ;;  %s578_s6 = sshll.u32 (!%p144_p10), %s742_s12, 6  ;;  %s171_s7 = scalar_lea.vmem (!%p144_p10), [#allocation2], %s556_s5 }
  0x11   : > { %s468_s8 = sshll.u32 (!%p144_p10), %s171_s7, 4  ;;  %s857_s18 = scalar_lea.hbm (!%p144_p10), %s908_s2, %s578_s6  ;;  %s859_s8 = int_to_ptr.vmem [resolvable:$true] %s468_s8 }
  0x12   : > { %v209_v14 = vsub.s32 (!%p144_p10), 0, %v200_v10  ;;  %v243_v15 = vsub.s32 (!%p144_p10), 1, %v200_v10  ;;  %v201_v16 = vadd.s32 (!%p144_p10), 8, %v200_v10  ;;  %s672_s20 = scalar_lea.vmem (!%p144_p10), %s859_s8, 64 }
  0x13   : > { %p673_p12 = scmp.ne.s32.totalorder (!%p144_p10), %s859_s8, %s672_s20 }
  0x15   : > { %p674_p13 = pnand (!%p144_p10), %p673_p12, %p809_p4 }
  0x16   : > { %s173_s23 = scalar_select %p172_p11, %s742_s12, 1 }
  0x17   : > { %s454_s12 = scalar_lea.sflag [#allocation3], %s169_s4  ;;  %p675_p0 = pneg %p674_p13 }
  0x18   : > { %s559_s24 = sshll.u32 %s173_s23, 1  ;;  %s581_s25 = sshll.u32 %s173_s23, 6 }
  0x19   : > { %s183_s28 = scalar_lea.vmem %s907_s1, %s559_s24  ;;  %s832_s3 = scalar_lea.vmem %s906_s0, %s581_s25 }
  0x1a   : > { %v192_v0 = vld [vmem:[%s183_s28] sm:$0x3]  ;;  %v185_v45 = vld [vmem:[%s832_s3 + $0x8] sm:$0xff]  ;;  %v186_v47 = vld [vmem:[%s832_s3 + $0x10] sm:$0xff]  ;;  %s753_s23 = smov [#allocation2]  }
  0x1b   : > { %v184_v1 = vld [vmem:[%s832_s3] sm:$0xff]  ;;  %v193_v3 = vadd.f32 1.0, %v192_v0  ;;  %v189_v46 = vld [vmem:[%s832_s3 + $0x28] sm:$0xff]  ;;  %v190_v48 = vld [vmem:[%s832_s3 + $0x30] sm:$0xff]  ;;  %s676_s24 = sshll.u32 %s753_s23, 4  ;;  %s677_s24 = int_to_ptr.vmem [resolvable:$false] %s676_s24 }
  0x1c   : > { %v188_v2 = vld [vmem:[%s832_s3 + $0x20] sm:$0xff]  ;;  %596 = vmatprep.mubr.msk.f32.mxu0 %vm275_vm0, %v184_v1  ;;  %v187_v49 = vld [vmem:[%s832_s3 + $0x18] sm:$0xff]  ;;  %s678_s25 = scalar_lea.vmem %s677_s24, 128  ;;  %p679_p1 = scmp.lt.s32.totalorder %s859_s8, %s677_s24 }
  0x1d   : > { %602 = vmatprep.mubr.msk.f32.mxu1 %vm275_vm0, %v188_v2  ;;  %v194_v4 = vmul.f32 16.0, %v193_v3  ;;  %v191_v50 = vld [vmem:[%s832_s3 + $0x38] sm:$0xff]  ;;  %p680_p2 = scmp.lt.s32.totalorder %s678_s25, %s672_s20 }
  0x1f   : > { %v560_v5 = vadd.f32 -1.0, %v194_v4  ;;  %p681_p3 = por %p680_p2, %p679_p1 }
  0x21   : > { %v196_v6 = vmul.f32 0.5, %v560_v5  ;;  %p682_p5 = pnand %p681_p3, %p675_p0 }
  0x23   : > { %v197_v8 = vmax.f32 %v196_v6, -2.0 }
  0x25   : > { %v198_v9 = vmin.f32 %v197_v8, 17.0 }
  0x27   : > { %v202_v11 = vfloor.f32 %v198_v9 }
  0x29   : > { %v203_v12 = vsub.f32 %v198_v9, %v202_v11  ;;  %v614_v13 = vtrunc.f32 %v202_v11 }
  0x2b   : > { %v204_v17 = vsub.f32 1.0, %v203_v12  ;;  %v615_v18 = vcvt.f32.s32 %v614_v13  ;;  %v236_v23 = vrot.slane %v203_v12, %v209_v14  ;;  %v270_v25 = vrot.slane %v203_v12, %v243_v15 }
  0x2d   : > { %v206_v19 = vadd.s32 1, %v615_v18  ;;  %v210_v20 = vrot.slane %v615_v18, %v209_v14  ;;  %v220_v21 = vrot.slane %v204_v17, %v209_v14  ;;  %v244_v22 = vrot.slane %v615_v18, %v243_v15 }
  0x2e   : > { %v254_v24 = vrot.slane %v204_v17, %v243_v15 }
  0x2f   : > { %vm211_vm1 = vcmp.eq.s32.totalorder %v200_v10, %v210_v20  ;;  %vm212_vm2 = vcmp.eq.s32.totalorder %v201_v16, %v210_v20  ;;  %v226_v26 = vrot.slane %v206_v19, %v209_v14  ;;  %vm246_vm3 = vcmp.eq.s32.totalorder %v201_v16, %v244_v22 }
  0x30   : > { %v561_v28 = vsel %vm211_vm1, 1.0, %v752_v27  ;;  %v562_v29 = vsel %vm212_vm2, 1.0, %v752_v27  ;;  %v566_v30 = vsel %vm246_vm3, 1.0, %v752_v27  ;;  %v260_v31 = vrot.slane %v206_v19, %v243_v15 }
  0x31   : > { %v221_v32 = vmul.f32 %v561_v28, %v220_v21  ;;  %v222_v33 = vmul.f32 %v562_v29, %v220_v21  ;;  %vm227_vm4 = vcmp.eq.s32.totalorder %v200_v10, %v226_v26  ;;  %vm228_vm5 = vcmp.eq.s32.totalorder %v201_v16, %v226_v26 }
  0x32   : > { %v563_v34 = vsel %vm227_vm4, 1.0, %v752_v27  ;;  %v564_v35 = vsel %vm228_vm5, 1.0, %v752_v27  ;;  %v256_v36 = vmul.f32 %v566_v30, %v254_v24  ;;  %vm262_vm6 = vcmp.eq.s32.totalorder %v201_v16, %v260_v31 }
  0x33   : > { %v237_v37 = vmul.f32 %v563_v34, %v236_v23  ;;  %v238_v38 = vmul.f32 %v564_v35, %v236_v23  ;;  %v568_v39 = vsel %vm262_vm6, 1.0, %v752_v27  ;;  %vm245_vm7 = vcmp.eq.s32.totalorder %v200_v10, %v244_v22 }
  0x34   : > { %v272_v40 = vmul.f32 %v568_v39, %v270_v25  ;;  %vm261_vm8 = vcmp.eq.s32.totalorder %v200_v10, %v260_v31  ;;  %v565_v51 = vsel %vm245_vm7, 1.0, %v752_v27 }
  0x35   : > { %v239_v41 = vadd.f32 %v237_v37, %v221_v32  ;;  %v240_v42 = vadd.f32 %v238_v38, %v222_v33  ;;  %v567_v52 = vsel %vm261_vm8, 1.0, %v752_v27  ;;  %v255_v53 = vmul.f32 %v565_v51, %v254_v24 }
  0x36   : > { %v274_v43 = vadd.f32 %v272_v40, %v256_v36  ;;  %v271_v54 = vmul.f32 %v567_v52, %v270_v25 }
  0x37   : > { %v608_v44 = vpack.c.bf16 %v240_v42, %v239_v41 }
  0x38   : > { %v273_v55 = vadd.f32 %v271_v54, %v255_v53 }
  0x39   : > { %609 = vmatprep.subr.bf16.mxu0 %v608_v44  ;;  %612 = vmatprep.subr.bf16.mxu1 %v608_v44 }
  0x3a   : > { %611 = vmatpush3.bf16.msra.mxu0 %v608_v44  ;;  %613 = vmatpush3.bf16.msra.mxu1 %v608_v44 }
  0x3d   : > { %597 = vmatmul.mubr.msk.f32.vlgmr.msra.gmra.mrb[0].mxu0 %vm275_vm0, %v185_v45  ;;  %603 = vmatmul.mubr.msk.f32.vlgmr.msra.gmra.mrb[0].mxu1 %vm275_vm0, %v189_v46 }
  0x3e   : > { %599 = vmatprep.mubr.msk.f32.mxu0 %vm275_vm0, %v186_v47  ;;  %605 = vmatprep.mubr.msk.f32.mxu1 %vm275_vm0, %v190_v48 }
  0x41   : > { %600 = vmatmul.mubr.msk.f32.gmra.mrb[2].mxu0 %vm275_vm0, %v187_v49  ;;  %606 = vmatmul.mubr.msk.f32.gmra.mrb[2].mxu1 %vm275_vm0, %v191_v50 }
 0x110   : > { %v598_v56 = vpop.f32.mrb[0].mxu0  ;;  %v604_v57 = vpop.f32.mrb[0].mxu1 }
 0x111   : > { %v406_v58 = vmul.f32 %v598_v56, %v274_v43  ;;  %v410_v59 = vmul.f32 %v604_v57, %v274_v43  ;;  %v366_v60 = vpop.f32.mrb[1].mxu0  ;;  %v386_v61 = vpop.f32.mrb[1].mxu1 }
 0x112   : > { %v405_v62 = vmul.f32 %v366_v60, %v273_v55  ;;  %v409_v63 = vmul.f32 %v386_v61, %v273_v55 }
 0x114   : > { %v413_v0 = vadd.f32 %v406_v58, %v405_v62  ;;  %v427_v1 = vadd.f32 %v410_v59, %v409_v63  ;;  %v601_v2 = vpop.f32.mrb[2].mxu0  ;;  %v607_v3 = vpop.f32.mrb[2].mxu1 }
 0x115   : > { %v408_v4 = vmul.f32 %v601_v2, %v274_v43  ;;  %v412_v5 = vmul.f32 %v607_v3, %v274_v43  ;;  %v376_v6 = vpop.f32.mrb[3].mxu0  ;;  %v396_v7 = vpop.f32.mrb[3].mxu1 }
 0x116   : > { %v414_v8 = vrot.slane %v413_v0, 4  ;;  %v428_v9 = vrot.slane %v427_v1, 4  ;;  %v407_v10 = vmul.f32 %v376_v6, %v273_v55  ;;  %v411_v11 = vmul.f32 %v396_v7, %v273_v55 }
 0x118   : > { %v415_v12 = vadd.f32 %v414_v8, %v413_v0  ;;  %v429_v13 = vadd.f32 %v428_v9, %v427_v1  ;;  %v420_v14 = vadd.f32 %v408_v4, %v407_v10  ;;  %v434_v15 = vadd.f32 %v412_v5, %v411_v11 }
 0x11a   : > { %v416_v16 = vrot.slane %v415_v12, 2  ;;  %v430_v17 = vrot.slane %v429_v13, 2  ;;  %v421_v18 = vrot.slane %v420_v14, 4  ;;  %v435_v19 = vrot.slane %v434_v15, 4 }
 0x11c   : > { %v417_v20 = vadd.f32 %v416_v16, %v415_v12  ;;  %v422_v21 = vadd.f32 %v421_v18, %v420_v14  ;;  %v436_v22 = vadd.f32 %v435_v19, %v434_v15  ;;  %v431_v23 = vadd.f32 %v430_v17, %v429_v13 }
 0x11e   : > { %v423_v24 = vrot.slane %v422_v21, 2  ;;  %v437_v25 = vrot.slane %v436_v22, 2  ;;  %v418_v26 = vrot.slane %v417_v20, 1  ;;  %v432_v29 = vrot.slane %v431_v23, 1 }
 0x120   : > { %v424_v27 = vadd.f32 %v423_v24, %v422_v21  ;;  %v438_v28 = vadd.f32 %v437_v25, %v436_v22  ;;  %v419_v32 = vadd.f32 %v418_v26, %v417_v20  ;;  %v433_v34 = vadd.f32 %v432_v29, %v431_v23 }
 0x122   : > { %v425_v30 = vrot.slane %v424_v27, 1  ;;  %v439_v31 = vrot.slane %v438_v28, 1 }
 0x124   : > { %v426_v33 = vadd.f32 %v425_v30, %v424_v27  ;;  %v440_v35 = vadd.f32 %v439_v31, %v438_v28 }
 0x126   : > { %v446_v36 = vsel %vm445_vm9, %v426_v33, %v419_v32 }
 0x127   : > { %v448_v37 = vsel %vm447_vm10, %v433_v34, %v446_v36 }
 0x128   : > { %v450_v38 = vsel %vm449_vm11, %v440_v35, %v448_v37 }
 0x129   : > { %452 = vst [vmem:[%s171_s7] sm:$0xf] %v450_v38 }
 0x12a   : > { %685 = shalt.err (!%p682_p5)
}
 0x12b   : > { %s686_s26 = scalar_lea.hbm %s857_s18, 64  ;;  %s690_s29 = scalar_lea.hbm %s908_s2, 128 }
 0x12c   : > { %p687_p6 = scmp.ne.s32.totalorder %s857_s18, %s686_s26  ;;  %p691_p10 = scmp.lt.u32.totalorder %s857_s18, %s908_s2 }
 0x12d   : > { %p692_p11 = scmp.lt.u32.totalorder %s690_s29, %s686_s26  ;;  %p694_p13 = scmp.lt.u32.totalorder %s686_s26, %s857_s18 }
 0x12e   : > { %p688_p7 = pnand %p687_p6, %p809_p4 }
 0x12f   : > { %p693_p12 = por %p692_p11, %p691_p10 }
 0x130   : > { %p689_p9 = pneg %p688_p7 }
 0x131   : > { %p695_p0 = por %p694_p13, %p693_p12 }
 0x133   : > { %p696_p1 = pnand %p695_p0, %p689_p9 }
 0x135   : > { %699 = shalt.err (!%p696_p1)
}
 0x136   : > { %616 = dma.vmem_to_hbm [thread:$0]  (%p809_p4), %s859_s8, 64, %s857_s18, %s454_s12  }
 0x137 PF: > { %p622_p2 = scmp.ge.s32.totalorder %s750_s14, 2  ;;  %s480_s4 = sand.u32 1, %s730_s9  }
 0x138   : > { %s481_s5 = scalar_lea.sflag [#allocation3], %s480_s4 }
 0x139   : > { %p619_p3 = pnand %p622_p2, %p816_p8 }
 0x13b   : > { %725 = dma.done.wait (!%p619_p3), %s481_s5, 64  }
 0x13c   : > { %727 = vsyncadd (!%p619_p3), %s481_s5, 4294967232  ;;  %s15_s14 = sadd.s32 1, %s750_s14   ;;  %s911_s9 = smov %s734_s10 }
 0x13d   : > { %p12_p5 = scmp.ge.s32.totalorder %s15_s14, 4   ;;  %s912_s10 = smov %s738_s11 }
 0x13e   : > { %s913_s11 = smov %s822_s22  ;;  %s914_s12 = smov %s746_s13 }
 0x13f   : > { %s915_s13 = smov %s917_s17  ;;  %14 = sbr.rel (!%p12_p5) target bundleno = 4 (0x4), region = 66 }
 0x146   :  { %486 = vsyncpa [#allocation3], 1 }
 0x147   :  { %488 = vsyncpa [#allocation3 + $0x1], 1 }

</bundles_post_ra>
